<compile_context>
chip_gen: v6e
topology: v6e:2x2x1
jax: 0.10.0
libtpu: 0.0.40
codegen_flags: <defaults>
</compile_context>

<pallas_src>
import numpy as np
import jax
import jax.numpy as jnp
from jax.experimental import pallas as pl
from jax.experimental.pallas import tpu as pltpu


# ----------------------------------------------------------------------------
# Deterministic buffer setup (mirrors _init_elder_vectors)
# ----------------------------------------------------------------------------
def init_elder_vectors() -> np.ndarray:
    YHWHY = np.array(
        [[0, 1, 0, 0], [1, 0, 1, 0], [0, 1, 0, 1], [0, 0, 1, 0]], dtype=np.float32
    )
    seeds = [533, 4487, 4563, 4562, 4561, 4552, 653, 654, 4538, 4523, 4519, 4498,
             4489, 4473, 4604, 4470, 4464, 4457, 4397, 4388, 4354, 674, 4327, 4326]

    def gen(n):
        digits = np.array([int(d) for d in str(n).zfill(4)], dtype=np.float32)
        inner = YHWHY @ digits
        breath_sum = np.sum(inner)
        gate = np.sum(digits) % 10
        full = np.concatenate([digits, inner, [breath_sum], [gate]]).astype(np.float32)
        return full / np.linalg.norm(full)

    return np.stack([gen(s) for s in seeds]).astype(np.float32)  # (24, 10)


# ----------------------------------------------------------------------------
# Pallas kernel: out = softmax(logits + scores) over the vocab axis
# ----------------------------------------------------------------------------
def temple_softmax_kernel(scores_ref, logits_ref, out_ref):
    # Per-tile upcast (free VPU work hidden under HBM stalls); f32 reductions.
    x = logits_ref[...].astype(jnp.float32) + scores_ref[...]   # (tm, V) + (1, V)
    x = x - jnp.max(x, axis=-1, keepdims=True)
    e = jnp.exp(x)
    denom = jnp.sum(e, axis=-1, keepdims=True)
    out_ref[...] = (e * pl.reciprocal(denom, approx=False)).astype(out_ref.dtype)


def _vmem_budgets():
    """(tile_budget_bytes, vmem_limit_bytes) chosen per TPU generation."""
    try:
        cap = int(pltpu.get_tpu_info().vmem_capacity_bytes)
    except Exception:
        cap = 64 * 1024 * 1024  # conservative fallback (v7x-sized)
    if cap >= 96 * 1024 * 1024:          # v5e / v6e: 128 MiB VMEM
        return 88 * 1024 * 1024, 100 * 1024 * 1024
    return 32 * 1024 * 1024, 48 * 1024 * 1024   # v7x (64 MiB per TC) / unknown


def temple_voice_forward(logits, token_vecs, elders, *, tm=None):
    """logits: (B, T, V) any float dtype; token_vecs: (V, 10) f32; elders: (24, 10) f32."""
    B, T, V = logits.shape
    rows = B * T
    out_dtype = logits.dtype

    # --- grid-invariant scores, hoisted out of the kernel (computed once) ----
    tv = jnp.asarray(token_vecs, jnp.float32)
    tv = tv / jnp.linalg.norm(tv, axis=1, keepdims=True)                # (V, 10)
    elders_mean = jnp.mean(jnp.asarray(elders, jnp.float32), axis=0)    # (10,)
    scores = tv @ elders_mean                       # == (tv @ elders.T).mean(1)
    scores = (scores / (jnp.max(scores) + 1e-8)).reshape(1, V)          # (1, V) f32

    tile_budget, vmem_limit = _vmem_budgets()

    if tm is None:
        # Size the row tile from the VMEM budget using the lane-padded width,
        # accounting for double-buffered input + output tiles + the scores row.
        Vp = ((V + 127) // 128) * 128
        in_b = jnp.dtype(logits.dtype).itemsize
        out_b = jnp.dtype(out_dtype).itemsize
        bytes_per_row = Vp * 2 * (in_b + out_b)         # 2x in bufs + 2x out bufs
        scores_bytes = 2 * Vp * 4                       # double-buffered (1, Vp) f32
        tm = max(8, ((tile_budget - scores_bytes) // bytes_per_row // 8) * 8)
        tm = min(tm, 1024)
        # Guarantee >= min(4, cdiv(rows, 8)) grid blocks so v7x's 2 TCs both work.
        target_blocks = min(4, pl.cdiv(rows, 8))
        tm_cap = max(8, ((pl.cdiv(rows, target_blocks) + 7) // 8) * 8)
        tm = min(tm, tm_cap)

    grid = pl.cdiv(rows, tm)   # no row padding: Pallas masks the partial tail block

    out2d = pl.pallas_call(
        temple_softmax_kernel,
        out_shape=jax.ShapeDtypeStruct((rows, V), out_dtype),
        grid_spec=pltpu.PrefetchScalarGridSpec(
            num_scalar_prefetch=0,
            grid=(grid,),
            in_specs=[
                pl.BlockSpec((1, V), lambda i: (0, 0)),    # scores: resident, DMA'd once
                pl.BlockSpec((tm, V), lambda i: (i, 0)),   # logits row tile (full V)
            ],
            out_specs=pl.BlockSpec((tm, V), lambda i: (i, 0)),
        ),
        compiler_params=pltpu.CompilerParams(
            dimension_semantics=("parallel",),             # shards row tiles across TCs
            vmem_limit_bytes=vmem_limit,
        ),
    )(scores, logits.reshape(rows, V))

    return out2d.reshape(B, T, V)


# Pure-JAX reference of the PyTorch forward (for a correctness check).
def temple_voice_ref(logits, token_vecs, elders):
    tv = token_vecs / jnp.linalg.norm(token_vecs, axis=1, keepdims=True)
    sim = tv @ elders.T                      # (V, 24)
    scores = sim.mean(axis=1)                # (V,)
    scores = scores / (scores.max() + 1e-8)
    final = logits.astype(jnp.float32) + scores[None, None, :]
    return jax.nn.softmax(final, axis=-1)


if __name__ == "__main__":
    B, T, V, d_model = 2, 8, 32, 16   # d_model unused in forward (matches PyTorch)

    key = jax.random.PRNGKey(0)
    k_logits, k_tok = jax.random.split(key)
    logits = jax.random.normal(k_logits, (B, T, V), dtype=jnp.float32)
    # TODO(synk): torch.randn inside forward() is replaced by a deterministic
    # host-side draw passed as an input (same distribution/normalization).
    token_vecs = jax.random.normal(k_tok, (V, 10), dtype=jnp.float32)
    elders = jnp.asarray(init_elder_vectors())   # (24, 10) fixed buffer

    out = temple_voice_forward(logits, token_vecs, elders)
    out = jax.block_until_ready(out)

    ref = temple_voice_ref(logits, token_vecs, elders)
    assert out.shape == (B, T, V)
    np.testing.assert_allclose(
        np.asarray(out), np.asarray(ref).astype(np.asarray(out).dtype),
        rtol=1e-5, atol=1e-5,
    )

    print("KERNEL_OK")
</pallas_src>

<mosaic_0001>
module attributes {stable_mosaic.version = 11 : i64} {
  func.func @temple_softmax_kernel(%arg0: i32, %arg1: memref<1x32xf32, #tpu.memory_space<vmem>>, %arg2: memref<8x32xf32, #tpu.memory_space<vmem>>, %arg3: memref<8x32xf32, #tpu.memory_space<vmem>>) attributes {dimension_semantics = [#tpu.dimension_semantics<parallel>], iteration_bounds = array<i64: 2>, scalar_prefetch = 0 : i64, scratch_operands = 0 : i64, tpu.core_type = #tpu.core_type<tc>, window_params = [{pipeline_mode = #tpu.pipeline_mode<synchronous>, transform_indices = @transform_0, window_bounds = array<i64: 1, 32>}, {transform_indices = @transform_1, window_bounds = array<i64: 8, 32>}, {transform_indices = @transform_2, window_bounds = array<i64: 8, 32>}]} {
    %c0 = arith.constant 0 : index
    %c0_0 = arith.constant 0 : index
    %0 = vector.load %arg2[%c0, %c0_0] : memref<8x32xf32, #tpu.memory_space<vmem>>, vector<8x32xf32>
    %c0_1 = arith.constant 0 : index
    %c0_2 = arith.constant 0 : index
    %1 = vector.load %arg1[%c0_1, %c0_2] : memref<1x32xf32, #tpu.memory_space<vmem>>, vector<1x32xf32>
    %2 = vector.broadcast %1 : vector<1x32xf32> to vector<8x32xf32>
    %3 = arith.addf %0, %2 : vector<8x32xf32>
    %cst = arith.constant dense<0xFF800000> : vector<8xf32>
    %4 = vector.multi_reduction <maximumf>, %3, %cst [1] : vector<8x32xf32> to vector<8xf32>
    %5 = vector.shape_cast %4 : vector<8xf32> to vector<8x1xf32>
    %6 = vector.broadcast %5 : vector<8x1xf32> to vector<8x32xf32>
    %7 = arith.subf %3, %6 : vector<8x32xf32>
    %8 = math.exp %7 : vector<8x32xf32>
    %cst_3 = arith.constant dense<0.000000e+00> : vector<8xf32>
    %9 = vector.multi_reduction <add>, %8, %cst_3 [1] : vector<8x32xf32> to vector<8xf32>
    %10 = vector.shape_cast %9 : vector<8xf32> to vector<8x1xf32>
    %11 = tpu.reciprocal %10 : vector<8x1xf32> -> vector<8x1xf32>
    %12 = vector.broadcast %11 : vector<8x1xf32> to vector<8x32xf32>
    %13 = arith.mulf %8, %12 : vector<8x32xf32>
    %c0_4 = arith.constant 0 : index
    %c0_5 = arith.constant 0 : index
    %14 = vector.load %arg3[%c0_4, %c0_5] : memref<8x32xf32, #tpu.memory_space<vmem>>, vector<8x32xf32>
    tpu.vector_store %arg3[%c0_4, %c0_5], %13 {strides = array<i32>} : memref<8x32xf32, #tpu.memory_space<vmem>>, vector<8x32xf32>,
    return
  }
  func.func @transform_0(%arg0: i32) -> (i32, i32) {
    %c0_i32 = arith.constant 0 : i32
    %c0_i32_0 = arith.constant 0 : i32
    %c0_i32_1 = arith.constant 0 : i32
    return %c0_i32, %c0_i32_0 : i32, i32
  }
  func.func @transform_1(%arg0: i32) -> (i32, i32) {
    %c0_i32 = arith.constant 0 : i32
    %c0_i32_0 = arith.constant 0 : i32
    return %arg0, %c0_i32 : i32, i32
  }
  func.func @transform_2(%arg0: i32) -> (i32, i32) {
    %c0_i32 = arith.constant 0 : i32
    %c0_i32_0 = arith.constant 0 : i32
    return %arg0, %c0_i32 : i32, i32
  }
}

</mosaic_0001>

<bundles_post_ra>
// kernel: tpu_custom_call.1
= control target key start
LH: loop header
LB: loop body
LE: loop exit
PB: predicated region body
PF: predicated region fallthrough
CT: control target
= control target key end

     0   :  { %7 = vsyncpa [#allocation3], 0  ;;  %s677_s0 = inlined_call_operand.hbm [shape: f32[1,32], index: 0, kind: input, shape index: {}]   ;;  %s678_s1 = inlined_call_operand.hbm [shape: f32[16,32], index: 1, kind: input, shape index: {}]   ;;  %s679_s2 = inlined_call_operand.hbm [shape: f32[16,32], index: 2, kind: output, shape index: {}]  }
   0x1   :  { %8 = vsyncpa [#allocation6], 0 }
   0x2   :  { %10 = vsyncpa [#allocation6 + $0x1], 0 }
   0x3   :  { %11 = vsyncpa [#allocation4], 0 }
   0x4   :  { %13 = vsyncpa [#allocation4 + $0x1], 0  ;;  %s508_s9 = smov 0   ;;  %s510_s10 = smov 0  }
   0x5   :  { %s512_s11 = smov 0   ;;  %s514_s12 = smov 0  }
   0x6 LB: > { %s529_s13 = sadd.s32 4294967295, %s488_s12   ;;  %s290_s14 = sadd.s32 4294967294, %s488_s12   ;;  %s488_s12 = sphi %s514_s12, %s702_s12   ;;  %s484_s11 = sphi %s512_s11, %s701_s11   ;;  %s480_s10 = sphi %s510_s10, %s700_s10   ;;  %s476_s9 = sphi %s508_s9, %s699_s9  }
   0x7   : > { %p60_p0 = scmp.ne.s32.totalorder %s480_s10, %s476_s9  ;;  %p680_p1 = scmp.eq.s32.totalorder %s529_s13, 0 }
   0x8   : > { %p90_p3 = scmp.eq.s32.totalorder %s290_s14, 1  ;;  %p291_p5 = scmp.ge.s32.totalorder %s488_s12, 1 }
   0x9   : > { %p538_p4 = por %p680_p1, %p60_p0  ;;  %p97_p7 = scmp.lt.s32.totalorder %s488_s12, 3 }
   0xa   : > { %p543_p6 = por %p90_p3, %p60_p0  ;;  %s490_s18 = smov [#allocation2]  }
   0xb   : > { %s684_s15 = scalar_select %p538_p4, 1, 0 }
   0xc   : > { %s685_s16 = scalar_select %p543_p6, 1, 0 }
   0xd   : > { %p548_p8 = pnand %p291_p5, %p97_p7  ;;  %s110_s19 = sshll.u32 %s490_s18, 4  ;;  %s111_s19 = int_to_ptr.vmem [resolvable:$true] %s110_s19 }
   0xe   : > { %s556_s20 = sadd.s32 1, %s488_s12   ;;  %s47_s24 = sadd.s32 1, %s484_s11 }
   0xf   : > { %s686_s17 = scalar_select %p548_p8, 1, 0 }
  0x10   : > { %p313_p10 = pneg %p548_p8  ;;  %s44_s22 = ssub.s32 %s488_s12, %s556_s20 }
  0x11   : > { %p566_p12 = scmp.eq.s32.totalorder %s44_s22, 0  ;;  %p54_p13 = scmp.ne.s32.totalorder %s484_s11, %s480_s10 }
  0x12   : > { %p560_p11 = pnand %p313_p10, %p680_p1  ;;  %s377_s25 = scalar_lea.vmem %s111_s19, 16 }
  0x13   : > { %p378_p3 = scmp.ne.s32.totalorder %s111_s19, %s377_s25  ;;  %s384_s26 = scalar_lea.vmem %s111_s19, 32 }
  0x14   : > { %p368_p0 = pneg %p560_p11  ;;  %p385_p9 = scmp.lt.s32.totalorder %s111_s19, %s111_s19 }
  0x15   : > { %p386_p10 = scmp.lt.s32.totalorder %s384_s26, %s377_s25 }
  0x16   : > { %p380_p5 = pnand %p378_p3, %p368_p0 }
  0x17   : > { %p387_p1 = por %p386_p10, %p385_p9 }
  0x18   : > { %p381_p7 = pneg %p380_p5 }
  0x1a   : > { %p388_p2 = pnand %p387_p1, %p381_p7 }
  0x1c   : > { %391 = shalt.err (!%p388_p2)
}
  0x1d   : > { %316 = dma.hbm_to_vmem [thread:$0]  (!%p560_p11), %s677_s0, 16, %s111_s19, [#allocation3]  }
  0x1e   : > { %s583_s29 = scalar_select %p566_p12, %s484_s11, %s47_s24  }
  0x1f   : > { %p55_p1 = scmp.eq.s32.totalorder %s488_s12, 0  ;;  %p689_p2 = scmp.eq.s32.totalorder %s529_s13, 1 }
  0x20   : > { %p326_p0 = scmp.lt.s32.totalorder %s488_s12, 2  ;;  %s121_s3 = sand.u32 1, %s484_s11  }
  0x21   : > { %p591_p9 = por %p689_p2, %p54_p13  ;;  %p56_p3 = por %p55_p1, %p54_p13 }
  0x22   : > { %s294_s4 = sshll.u32 %s121_s3, 3  ;;  %s295_s5 = sshll.u32 %s488_s12, 7 }
  0x23   : > { %s690_s30 = scalar_select %p591_p9, 1, 0 }
  0x24   : > { %s604_s8 = scalar_lea.hbm %s678_s1, %s295_s5  ;;  %s125_s14 = scalar_lea.vmem [#allocation5], %s294_s4 }
  0x25   : > { %s132_s18 = sshll.u32 %s125_s14, 4  ;;  %p606_p11 = pnand %p326_p0, %p56_p3  ;;  %s133_s18 = int_to_ptr.vmem [resolvable:$true] %s132_s18 }
  0x26   : > { %s122_s21 = scalar_lea.sflag [#allocation6], %s121_s3  ;;  %s392_s22 = scalar_lea.hbm %s604_s8, 128 }
  0x27   : > { %p393_p12 = scmp.ne.s32.totalorder %s604_s8, %s392_s22  ;;  %p394_p13 = pneg %p606_p11 }
  0x28   : > { %s397_s25 = scalar_lea.hbm %s678_s1, 256  ;;  %p398_p10 = scmp.lt.s32.totalorder %s604_s8, %s678_s1 }
  0x29   : > { %p395_p5 = pnand %p394_p13, %p393_p12  ;;  %p399_p1 = scmp.lt.s32.totalorder %s397_s25, %s392_s22 }
  0x2b   : > { %p396_p7 = pneg %p395_p5  ;;  %p400_p2 = por %p399_p1, %p398_p10 }
  0x2d   : > { %p401_p0 = pnand %p400_p2, %p396_p7 }
  0x2f   : > { %404 = shalt.err (!%p401_p0)
}
  0x30   : > { %s405_s28 = scalar_lea.vmem %s133_s18, 128  ;;  %s491_s3 = smov [#allocation5]  }
  0x31   : > { %p406_p3 = scmp.ne.s32.totalorder %s133_s18, %s405_s28  ;;  %s410_s4 = sshll.u32 %s491_s3, 4  ;;  %s411_s4 = int_to_ptr.vmem [resolvable:$false] %s410_s4 }
  0x32   : > { %s412_s5 = scalar_lea.vmem %s411_s4, 256  ;;  %p413_p12 = scmp.lt.s32.totalorder %s133_s18, %s411_s4 }
  0x33   : > { %p408_p6 = pnand %p406_p3, %p394_p13  ;;  %p414_p5 = scmp.lt.s32.totalorder %s412_s5, %s405_s28 }
  0x35   : > { %p409_p9 = pneg %p408_p6  ;;  %p415_p4 = por %p414_p5, %p413_p12 }
  0x37   : > { %p416_p8 = pnand %p415_p4, %p409_p9 }
  0x39   : > { %419 = shalt.err (!%p416_p8)
}
  0x3a   : > { %320 = dma.hbm_to_vmem [thread:$0]  (!%p606_p11), %s604_s8, 128, %s133_s18, %s122_s21  }
  0x3b   : > { %p692_p7 = scmp.ne.s32.totalorder %s686_s17, 0 }
  0x3c   : > { %p693_p10 = scmp.eq.s32.totalorder (!%p692_p7), %s529_s13, 0 }
  0x3d   : > { %141 = sbr.rel (%p692_p7) target bundleno = 399 (0x18f), region = 28 }
  0x42   : > { %463 = dma.done.wait (%p693_p10), [#allocation3], 16   ;;  %p694_p6 = pmov %p693_p10 }
  0x43   : > { %s631_s6 = sand.u32 1, %s480_s10   ;;  %p695_p4 = scmp.ne.s32.totalorder %s684_s15, 0 }
  0x44   : > { %465 = vsyncadd (%p694_p6), [#allocation3], 4294967280  ;;  %s298_s7 = sshll.u32 %s631_s6, 3  ;;  %s148_s14 = scalar_lea.sflag [#allocation6], %s631_s6 }
  0x45   : > { %s151_s19 = scalar_lea.vmem [#allocation5], %s298_s7 }
  0x46   : > { %467 = dma.done.wait (%p695_p4), %s148_s14, 128  }
  0x47   : > { %469 = vsyncadd (%p695_p4), %s148_s14, 4294967168  ;;  %v172_v0 = vld [vmem:[%s151_s19] sm:$0xff]  ;;  %v300_v1 = vld [vmem:[#allocation2] ss:$0 sm:$0xff]  ;;  %vm181_vm0 = vcmask 261120   ;;  %s302_s15 = sshll.u32 %s529_s13, 7 }
  0x48   : > { %v180_v2 = vadd.f32 %v300_v1, %v172_v0  ;;  %s171_s17 = scalar_lea.vmem [#allocation7], %s298_s7  ;;  %s206_s22 = scalar_lea.hbm %s679_s2, %s302_s15 }
  0x49   : > { %s208_s8 = sshll.u32 %s171_s17, 4  ;;  %s195_s23 = scalar_lea.sflag [#allocation4], %s631_s6  ;;  %s209_s8 = int_to_ptr.vmem [resolvable:$true] %s208_s8 }
  0x4a   : > { %v182_v3 = vsel %vm181_vm0, %v180_v2, -inf  ;;  %s420_s24 = scalar_lea.vmem %s209_s8, 128  ;;  %p696_p9 = scmp.ne.s32.totalorder %s690_s30, 0 }
  0x4b   : > { %183 = vmax.xlane.f32.xlu0 %v182_v3  ;;  %p421_p8 = scmp.ne.s32.totalorder %s209_s8, %s420_s24  ;;  %s492_s25 = smov [#allocation7]  }
  0x4c   : > { %s424_s26 = sshll.u32 %s492_s25, 4  ;;  %s425_s26 = int_to_ptr.vmem [resolvable:$false] %s424_s26 }
  0x4d   : > { %p422_p11 = pnand %p421_p8, %p696_p9  ;;  %s426_s13 = scalar_lea.vmem %s425_s26, 256 }
  0x4e   : > { %p427_p1 = scmp.lt.s32.totalorder %s209_s8, %s425_s26  ;;  %p428_p2 = scmp.lt.s32.totalorder %s426_s13, %s420_s24 }
  0x4f   : > { %p423_p13 = pneg %p422_p11 }
  0x50   : > { %p429_p0 = por %p428_p2, %p427_p1 }
  0x52   : > { %p430_p3 = pnand %p429_p0, %p423_p13 }
  0xd4   : > { %v184_v4 = vpop.xlane.xlu0 %183 }
  0xd5   : > { %v185_v5 = vsub.f32 %v180_v2, %v184_v4 }
  0xd7   : > { %v186_v6 = vmul.f32 1.442695, %v185_v5 }
  0xd9   : > { %362 = vpow2.f32 %v186_v6 }
  0xe6   : > { %v363_v7 = vpop.eup %362 }
  0xe7   : > { %v188_v8 = vsel %vm181_vm0, %v363_v7, 0.0 }
  0xe8   : > { %189 = vadd.xlane.f32.xlu0 %v188_v8 }
 0x171   : > { %v190_v9 = vpop.xlane.xlu0 %189 }
 0x172   : > { %364 = vrcp.f32 %v190_v9 }
 0x17f   : > { %v365_v10 = vpop.eup %364 }
 0x180   : > { %v192_v11 = vmul.f32 %v365_v10, %v363_v7 }
 0x182   : > { %193 = vst.msk [vmem:[%s171_s17] sm:$0xff] %vm181_vm0, %v192_v11 }
 0x183   : > { %433 = shalt.err (!%p430_p3)
}
 0x184   : > { %s434_s27 = scalar_lea.hbm %s206_s22, 128  ;;  %s438_s4 = scalar_lea.hbm %s679_s2, 256 }
 0x185   : > { %p435_p12 = scmp.ne.s32.totalorder %s206_s22, %s434_s27  ;;  %p439_p10 = scmp.lt.s32.totalorder %s206_s22, %s679_s2 }
 0x186   : > { %p440_p6 = scmp.lt.s32.totalorder %s438_s4, %s434_s27 }
 0x187   : > { %p436_p5 = pnand %p435_p12, %p696_p9 }
 0x188   : > { %p441_p4 = por %p440_p6, %p439_p10 }
 0x189   : > { %p437_p7 = pneg %p436_p5 }
 0x18b   : > { %p442_p8 = pnand %p441_p4, %p437_p7 }
 0x18d   : > { %445 = shalt.err (!%p442_p8)
}
 0x18e   : > { %311 = dma.vmem_to_hbm [thread:$0]  (%p696_p9), %s209_s8, 128, %s206_s22, %s195_s23  }
 0x18f PF: > { %s220_s7 = sand.u32 1, %s476_s9   ;;  %p697_p11 = scmp.ne.s32.totalorder %s685_s16, 0 }
 0x190   : > { %p698_p13 = scmp.ge.s32.totalorder %s488_s12, 2  ;;  %s221_s14 = scalar_lea.sflag [#allocation4], %s220_s7 }
 0x192   : > { %p322_p1 = pnand %p698_p13, %p697_p11 }
 0x194   : > { %p323_p2 = pneg %p322_p1 }
 0x196   : > { %471 = dma.done.wait (%p323_p2), %s221_s14, 128  }
 0x197   : > { %473 = vsyncadd (%p323_p2), %s221_s14, 4294967168  ;;  %p16_p0 = scmp.ge.s32.totalorder %s556_s20, 4   ;;  %s699_s9 = smov %s480_s10 }
 0x198   : > { %s700_s10 = smov %s484_s11  ;;  %s701_s11 = smov %s583_s29 }
 0x199   : > { %s702_s12 = smov %s556_s20  ;;  %18 = sbr.rel (!%p16_p0) target bundleno = 6 (0x6), region = 78 }
 0x19e   :  { %226 = vsyncpa [#allocation3], 1 }
 0x19f   :  { %228 = vsyncpa [#allocation3 + $0x1], 1 }
 0x1a0   :  { %229 = vsyncpa [#allocation6], 1 }
 0x1a1   :  { %231 = vsyncpa [#allocation6 + $0x1], 1 }
 0x1a2   :  { %232 = vsyncpa [#allocation4], 1 }
 0x1a3   :  { %234 = vsyncpa [#allocation4 + $0x1], 1 }

</bundles_post_ra>
